<compile_context>
chip_gen: v5e
topology: v5e:2x2
jax: 0.10.0
libtpu: 0.0.40
codegen_flags: <defaults>
</compile_context>

<pallas_src>
import jax
import jax.numpy as jnp
from jax import lax
from jax.experimental import pallas as pl
from jax.experimental.pallas import tpu as pltpu


def _round_up(x, m):
    return ((x + m - 1) // m) * m


def _vmem_capacity_bytes(default=64 * 1024 * 1024):
    try:
        return int(pltpu.get_tpu_info().vmem_capacity_bytes)
    except Exception:
        return default


def _sublane_pack(dtype):
    # 32-bit rows pack 8/sublane-group; bf16 packs 16; int8/fp8 pack 32.
    return {4: 8, 2: 16, 1: 32}.get(jnp.dtype(dtype).itemsize, 8)


def _make_floss_kernel(*, n, c_dim, spatial_size, tile, lane_width, steps,
                       any_mask):
    """Builds the kernel body.

    n, c_dim      batch / channel extents (Python ints)
    spatial_size  S (number of valid spatial elements)
    tile          spatial lanes per grid step (tile % lane_width == 0)
    lane_width    accumulator / chunk lane width
    steps         grid extent of the reduction axis per core-split
    any_mask      whether any block can overhang S (emit the masked path)
    """
    n_chunks = tile // lane_width

    def kernel(pred_ref, tgt_ref, tp_out, p_out, t_out, tp_sc, p_sc, t_sc):
        c = pl.program_id(0)            # core-split index ("parallel")
        s = pl.program_id(1)            # reduction step   ("arbitrary")

        @pl.when(s == 0)
        def _init():
            tp_sc[c] = jnp.zeros((n, c_dim, lane_width), jnp.float32)
            p_sc[c] = jnp.zeros((n, c_dim, lane_width), jnp.float32)
            t_sc[c] = jnp.zeros((n, lane_width), jnp.float32)

        # Logical (unclamped) spatial offset of this block.  The index_map
        # clamps the DMA source for fully out-of-range blocks; the mask below
        # uses the logical offset so those blocks contribute exactly zero.
        base = (c * steps + s) * tile

        def accumulate(apply_mask):
            # Chunked load -> cast -> (mask) -> mul -> accumulate, all in
            # vregs.  Each 128-lane group of the accumulators forms its own
            # independent add chain, giving the VPU enough ILP to stay under
            # the per-step DMA time.
            tp_acc = jnp.zeros((n, c_dim, lane_width), jnp.float32)
            p_acc = jnp.zeros((n, c_dim, lane_width), jnp.float32)
            t_acc = jnp.zeros((n, lane_width), jnp.float32)
            for k in range(n_chunks):
                lo, hi = k * lane_width, (k + 1) * lane_width
                pc = pred_ref[:, :, lo:hi].astype(jnp.float32)   # [N, C, LW]
                tc = tgt_ref[:, lo:hi].astype(jnp.float32)       # [N, LW]
                if apply_mask:
                    lane = lax.broadcasted_iota(jnp.int32, (1, lane_width), 1)
                    valid = (base + lo + lane) < spatial_size    # [1, LW]
                    # Mask BOTH operands: stale VMEM lanes may hold NaN bits,
                    # and P = sum(pred) must exclude them too.
                    tc = jnp.where(valid, tc, 0.0)
                    pc = jnp.where(valid[:, None, :], pc, 0.0)
                tp_acc = tp_acc + pc * tc[:, None, :]
                p_acc = p_acc + pc
                t_acc = t_acc + tc
            tp_sc[c] = tp_sc[c] + tp_acc
            p_sc[c] = p_sc[c] + p_acc
            t_sc[c] = t_sc[c] + t_acc

        if any_mask:
            overhang = (base + tile) > spatial_size

            @pl.when(overhang)
            def _masked():
                accumulate(True)

            @pl.when(jnp.logical_not(overhang))
            def _unmasked():
                accumulate(False)
        else:
            accumulate(False)

        @pl.when(s == pl.num_programs(1) - 1)
        def _finish():
            # Single cross-lane (XLU) reduce per core-split; the tiny partial
            # sums are combined (and the nonlinear epilogue applied) in the
            # wrapper.
            tp_out[0] = jnp.sum(tp_sc[c], axis=-1)                    # [N, C]
            p_out[0] = jnp.sum(p_sc[c], axis=-1)                      # [N, C]
            t_out[0] = jnp.sum(t_sc[c], axis=-1, keepdims=True)       # [N, 1]

    return kernel


def floss_pallas(inputs, target, beta=0.3, log_like=False, spatial_tile=None,
                 eps=1e-10):
    """inputs: [N, C, H, W] with C == 5 (matching FLoss), target: [N, H, W].

    Any float dtype (f32/bf16/...) is accepted; accumulation is always f32.
    spatial_tile=None auto-sizes the tile from the VMEM budget.
    """
    N, C, H, W = inputs.shape
    assert C == 5, "FLoss.forward uses channels 0..4, so C must be 5"
    assert target.shape == (N, H, W)
    S = H * W
    pred = inputs.reshape(N, C, S)
    tgt = target.reshape(N, S)

    in_bytes = jnp.dtype(inputs.dtype).itemsize
    tg_bytes = jnp.dtype(target.dtype).itemsize
    # VMEM bytes per spatial lane (pred tile + tgt tile), including the sublane
    # padding of the C / N axes inside the VMEM blocks.
    bytes_per_lane = (in_bytes * N * _round_up(C, _sublane_pack(inputs.dtype))
                      + tg_bytes * _round_up(N, _sublane_pack(target.dtype)))

    vmem_cap = _vmem_capacity_bytes()

    MAX_TS = 65536  # keeps the statically unrolled chunk loop a sane size
    if spatial_tile is None:
        budget = min(int(0.70 * vmem_cap), 96 << 20)  # double-buffered tiles
        ts = budget // (2 * bytes_per_lane)
        ts = max(512, min(ts, MAX_TS))
    else:
        ts = max(128, int(spatial_tile))

    if S < 128:
        ts = S                               # single full-extent block
    else:
        ts = min(ts, (S // 128) * 128)       # last block partial, never > S+pad
        ts = (ts // 256) * 256 if ts >= 256 else 128

    # Accumulator / chunk lane width: >=2 independent 128-lane chains per row.
    if ts % 256 == 0:
        lw = 256
    elif ts % 128 == 0:
        lw = 128
    else:
        lw = ts                              # S < 128: one small chunk

    total_blocks = (S + ts - 1) // ts
    num_splits = 2 if total_blocks >= 2 else 1      # dual-TC split on v7x
    steps = (total_blocks + num_splits - 1) // num_splits
    any_mask = (S % ts != 0) or (num_splits * steps != total_blocks)
    last_block = total_blocks - 1

    def pred_idx(c, s):
        return (0, 0, jnp.minimum(c * steps + s, last_block))

    def tgt_idx(c, s):
        return (0, jnp.minimum(c * steps + s, last_block))

    kernel = _make_floss_kernel(n=N, c_dim=C, spatial_size=S, tile=ts,
                                lane_width=lw, steps=steps, any_mask=any_mask)

    scratch_bytes = num_splits * (2 * N * _round_up(C, 8)
                                  + _round_up(N, 8)) * lw * 4
    vmem_limit = int(min(vmem_cap,
                         max(32 << 20,
                             2 * ts * bytes_per_lane + scratch_bytes
                             + (8 << 20))))

    cost = pl.CostEstimate(
        flops=3 * N * C * S + N * S,
        transcendentals=0,
        bytes_accessed=(N * C * in_bytes + N * tg_bytes) * S
                       + num_splits * N * (2 * C + 1) * 4,
    )

    out_shapes = (
        jax.ShapeDtypeStruct((num_splits, N, C), jnp.float32),   # TP partials
        jax.ShapeDtypeStruct((num_splits, N, C), jnp.float32),   # P partials
        jax.ShapeDtypeStruct((num_splits, N, 1), jnp.float32),   # T partials
    )

    tp_part, p_part, t_part = pl.pallas_call(
        kernel,
        out_shape=out_shapes,
        grid_spec=pltpu.PrefetchScalarGridSpec(
            num_scalar_prefetch=0,
            grid=(num_splits, steps),
            in_specs=[
                pl.BlockSpec((N, C, ts), pred_idx),
                pl.BlockSpec((N, ts), tgt_idx),
            ],
            out_specs=[
                pl.BlockSpec((1, N, C), lambda c, s: (c, 0, 0)),
                pl.BlockSpec((1, N, C), lambda c, s: (c, 0, 0)),
                pl.BlockSpec((1, N, 1), lambda c, s: (c, 0, 0)),
            ],
            scratch_shapes=[
                pltpu.VMEM((num_splits, N, C, lw), jnp.float32),  # TP acc
                pltpu.VMEM((num_splits, N, C, lw), jnp.float32),  # P acc
                pltpu.VMEM((num_splits, N, lw), jnp.float32),     # T acc
            ],
        ),
        compiler_params=pltpu.CompilerParams(
            dimension_semantics=("parallel", "arbitrary"),
            vmem_limit_bytes=vmem_limit,
        ),
        cost_estimate=cost,
    )(pred, tgt)

    # Combine per-core-split partials and apply the tiny nonlinear epilogue.
    tp = jnp.sum(tp_part, axis=0)                    # [N, C]
    p = jnp.sum(p_part, axis=0)                      # [N, C]
    t = jnp.sum(t_part, axis=0)                      # [N, 1]
    h = beta * t + p
    fmeasure = (1.0 + beta) * tp / (h + eps)
    if log_like:
        # Faithful to the PyTorch reference: eps only in the denominator, so
        # TP == 0 still yields +inf (same as the original module).
        per_sample = -jnp.log(fmeasure)
    else:
        per_sample = 1.0 - fmeasure
    # mean over batch per channel, then sum of the 5 channel losses
    return jnp.sum(jnp.mean(per_sample, axis=0))


def floss_reference(inputs, target, beta=0.3, log_like=False, eps=1e-10):
    """Pure-JAX reference mirroring the PyTorch forward."""
    N = inputs.shape[0]
    total = 0.0
    for c in range(5):
        pred = inputs[:, c, :, :].reshape(N, -1).astype(jnp.float32)
        tgt = target.reshape(N, -1).astype(jnp.float32)
        TP = jnp.sum(pred * tgt, axis=1)
        Hs = beta * jnp.sum(tgt, axis=1) + jnp.sum(pred, axis=1)
        f = (1.0 + beta) * TP / (Hs + eps)
        loss = -jnp.log(f) if log_like else 1.0 - f
        total = total + jnp.mean(loss)
    return total


if __name__ == "__main__":
    key = jax.random.PRNGKey(0)
    keys = jax.random.split(key, 8)

    def make(k1, k2, shape, dtype=jnp.float32):
        n, c, h, w = shape
        inp = jax.nn.sigmoid(
            jax.random.normal(k1, shape, dtype=jnp.float32)).astype(dtype)
        tg = (jax.random.uniform(k2, (n, h, w)) > 0.5).astype(dtype)
        return inp, tg

    # Test 1: tiny single-block, single core-split (S = 256), f32 + log_like.
    x1, t1 = make(keys[0], keys[1], (2, 5, 16, 16))
    out1 = jax.block_until_ready(floss_pallas(x1, t1, beta=0.3, log_like=False))
    ref1 = floss_reference(x1, t1, beta=0.3, log_like=False)
    assert jnp.allclose(out1, ref1, atol=1e-4, rtol=1e-4), (out1, ref1)

    out1l = jax.block_until_ready(floss_pallas(x1, t1, beta=0.3, log_like=True))
    ref1l = floss_reference(x1, t1, beta=0.3, log_like=True)
    assert jnp.allclose(out1l, ref1l, atol=1e-4, rtol=1e-4), (out1l, ref1l)

    # Test 2: dual core-split, multi-step, masked tail (S = 1600, ts = 512).
    x2, t2 = make(keys[2], keys[3], (2, 5, 40, 40))
    out2 = jax.block_until_ready(floss_pallas(x2, t2, spatial_tile=512))
    ref2 = floss_reference(x2, t2)
    assert jnp.allclose(out2, ref2, atol=1e-4, rtol=1e-4), (out2, ref2)

    # Test 3: exact division, no mask code emitted (S = 1024, ts = 256).
    x3, t3 = make(keys[4], keys[5], (2, 5, 32, 32))
    out3 = jax.block_until_ready(floss_pallas(x3, t3, spatial_tile=256))
    ref3 = floss_reference(x3, t3)
    assert jnp.allclose(out3, ref3, atol=1e-4, rtol=1e-4), (out3, ref3)

    # Test 4: odd block count -> clamped index_map + one fully masked-out block
    #         on the second core-split (S = 1280, ts = 512 -> 3 blocks).
    x4, t4 = make(keys[6], keys[7], (2, 5, 32, 40))
    out4 = jax.block_until_ready(floss_pallas(x4, t4, spatial_tile=512))
    ref4 = floss_reference(x4, t4)
    assert jnp.allclose(out4, ref4, atol=1e-4, rtol=1e-4), (out4, ref4)

    # Test 5: bf16 inputs (halved HBM traffic; in-kernel f32 accumulation,
    #         per-chunk cast, no whole-tile f32 temporary).
    x5, t5 = x2.astype(jnp.bfloat16), t2.astype(jnp.bfloat16)
    out5 = jax.block_until_ready(floss_pallas(x5, t5))
    ref5 = floss_reference(x5.astype(jnp.float32), t5.astype(jnp.float32))
    assert jnp.allclose(out5, ref5, atol=1e-4, rtol=1e-4), (out5, ref5)

    print("KERNEL_OK")
</pallas_src>

<mosaic_0001>
module attributes {stable_mosaic.version = 11 : i64} {
  func.func @kernel(%arg0: i32, %arg1: i32, %arg2: memref<2x5x256xf32, #tpu.memory_space<vmem>>, %arg3: memref<2x256xf32, #tpu.memory_space<vmem>>, %arg4: memref<1x2x5xf32, #tpu.memory_space<vmem>>, %arg5: memref<1x2x5xf32, #tpu.memory_space<vmem>>, %arg6: memref<1x2x1xf32, #tpu.memory_space<vmem>>, %arg7: memref<1x2x5x256xf32, #tpu.memory_space<vmem>>, %arg8: memref<1x2x5x256xf32, #tpu.memory_space<vmem>>, %arg9: memref<1x2x256xf32, #tpu.memory_space<vmem>>) attributes {dimension_semantics = [#tpu.dimension_semantics<parallel>, #tpu.dimension_semantics<arbitrary>], iteration_bounds = array<i64: 1, 1>, scalar_prefetch = 0 : i64, scratch_operands = 3 : i64, tpu.core_type = #tpu.core_type<tc>, window_params = [{transform_indices = @transform_0, window_bounds = array<i64: 2, 5, 256>}, {transform_indices = @transform_1, window_bounds = array<i64: 2, 256>}, {transform_indices = @transform_2, window_bounds = array<i64: 1, 2, 5>}, {transform_indices = @transform_3, window_bounds = array<i64: 1, 2, 5>}, {transform_indices = @transform_4, window_bounds = array<i64: 1, 2, 1>}]} {
    %c0_i32 = arith.constant 0 : i32
    %0 = arith.cmpi eq, %arg1, %c0_i32 : i32
    %1 = arith.extui %0 : i1 to i32
    %c0_i32_0 = arith.constant 0 : i32
    %2 = arith.cmpi ne, %1, %c0_i32_0 : i32
    scf.if %2 {
      %cst_25 = arith.constant 0.000000e+00 : f32
      %41 = vector.broadcast %cst_25 : f32 to vector<2x5x256xf32>
      %42 = arith.index_cast %arg0 : i32 to index
      %c0_26 = arith.constant 0 : index
      %c0_27 = arith.constant 0 : index
      %c0_28 = arith.constant 0 : index
      %43 = vector.load %arg7[%42, %c0_26, %c0_27, %c0_28] : memref<1x2x5x256xf32, #tpu.memory_space<vmem>>, vector<1x2x5x256xf32>
      %44 = vector.shape_cast %43 : vector<1x2x5x256xf32> to vector<2x5x256xf32>
      %45 = vector.shape_cast %41 : vector<2x5x256xf32> to vector<1x2x5x256xf32>
      tpu.vector_store %arg7[%42, %c0_26, %c0_27, %c0_28], %45 {strides = array<i32>} : memref<1x2x5x256xf32, #tpu.memory_space<vmem>>, vector<1x2x5x256xf32>,
      %cst_29 = arith.constant 0.000000e+00 : f32
      %46 = vector.broadcast %cst_29 : f32 to vector<2x5x256xf32>
      %47 = arith.index_cast %arg0 : i32 to index
      %c0_30 = arith.constant 0 : index
      %c0_31 = arith.constant 0 : index
      %c0_32 = arith.constant 0 : index
      %48 = vector.load %arg8[%47, %c0_30, %c0_31, %c0_32] : memref<1x2x5x256xf32, #tpu.memory_space<vmem>>, vector<1x2x5x256xf32>
      %49 = vector.shape_cast %48 : vector<1x2x5x256xf32> to vector<2x5x256xf32>
      %50 = vector.shape_cast %46 : vector<2x5x256xf32> to vector<1x2x5x256xf32>
      tpu.vector_store %arg8[%47, %c0_30, %c0_31, %c0_32], %50 {strides = array<i32>} : memref<1x2x5x256xf32, #tpu.memory_space<vmem>>, vector<1x2x5x256xf32>,
      %cst_33 = arith.constant 0.000000e+00 : f32
      %51 = vector.broadcast %cst_33 : f32 to vector<2x256xf32>
      %52 = arith.index_cast %arg0 : i32 to index
      %c0_34 = arith.constant 0 : index
      %c0_35 = arith.constant 0 : index
      %53 = vector.load %arg9[%52, %c0_34, %c0_35] : memref<1x2x256xf32, #tpu.memory_space<vmem>>, vector<1x2x256xf32>
      %54 = vector.shape_cast %53 : vector<1x2x256xf32> to vector<2x256xf32>
      %55 = vector.shape_cast %51 : vector<2x256xf32> to vector<1x2x256xf32>
      tpu.vector_store %arg9[%52, %c0_34, %c0_35], %55 {strides = array<i32>} : memref<1x2x256xf32, #tpu.memory_space<vmem>>, vector<1x2x256xf32>,
    } else {
    }
    %cst = arith.constant 0.000000e+00 : f32
    %3 = vector.broadcast %cst : f32 to vector<2x5x256xf32>
    %cst_1 = arith.constant 0.000000e+00 : f32
    %4 = vector.broadcast %cst_1 : f32 to vector<2x5x256xf32>
    %cst_2 = arith.constant 0.000000e+00 : f32
    %5 = vector.broadcast %cst_2 : f32 to vector<2x256xf32>
    %c0 = arith.constant 0 : index
    %c0_3 = arith.constant 0 : index
    %c0_4 = arith.constant 0 : index
    %6 = vector.load %arg2[%c0, %c0_3, %c0_4] : memref<2x5x256xf32, #tpu.memory_space<vmem>>, vector<2x5x256xf32>
    %c0_5 = arith.constant 0 : index
    %c0_6 = arith.constant 0 : index
    %7 = vector.load %arg3[%c0_5, %c0_6] : memref<2x256xf32, #tpu.memory_space<vmem>>, vector<2x256xf32>
    %8 = vector.shape_cast %7 : vector<2x256xf32> to vector<2x1x256xf32>
    %9 = vector.broadcast %8 : vector<2x1x256xf32> to vector<2x5x256xf32>
    %10 = arith.mulf %6, %9 : vector<2x5x256xf32>
    %11 = arith.addf %3, %10 : vector<2x5x256xf32>
    %12 = arith.addf %4, %6 : vector<2x5x256xf32>
    %13 = arith.addf %5, %7 : vector<2x256xf32>
    %14 = arith.index_cast %arg0 : i32 to index
    %c0_7 = arith.constant 0 : index
    %c0_8 = arith.constant 0 : index
    %c0_9 = arith.constant 0 : index
    %15 = vector.load %arg7[%14, %c0_7, %c0_8, %c0_9] : memref<1x2x5x256xf32, #tpu.memory_space<vmem>>, vector<1x2x5x256xf32>
    %16 = vector.shape_cast %15 : vector<1x2x5x256xf32> to vector<2x5x256xf32>
    %17 = arith.addf %16, %11 : vector<2x5x256xf32>
    %18 = arith.index_cast %arg0 : i32 to index
    %c0_10 = arith.constant 0 : index
    %c0_11 = arith.constant 0 : index
    %c0_12 = arith.constant 0 : index
    %19 = vector.load %arg7[%18, %c0_10, %c0_11, %c0_12] : memref<1x2x5x256xf32, #tpu.memory_space<vmem>>, vector<1x2x5x256xf32>
    %20 = vector.shape_cast %19 : vector<1x2x5x256xf32> to vector<2x5x256xf32>
    %21 = vector.shape_cast %17 : vector<2x5x256xf32> to vector<1x2x5x256xf32>
    tpu.vector_store %arg7[%18, %c0_10, %c0_11, %c0_12], %21 {strides = array<i32>} : memref<1x2x5x256xf32, #tpu.memory_space<vmem>>, vector<1x2x5x256xf32>,
    %22 = arith.index_cast %arg0 : i32 to index
    %c0_13 = arith.constant 0 : index
    %c0_14 = arith.constant 0 : index
    %c0_15 = arith.constant 0 : index
    %23 = vector.load %arg8[%22, %c0_13, %c0_14, %c0_15] : memref<1x2x5x256xf32, #tpu.memory_space<vmem>>, vector<1x2x5x256xf32>
    %24 = vector.shape_cast %23 : vector<1x2x5x256xf32> to vector<2x5x256xf32>
    %25 = arith.addf %24, %12 : vector<2x5x256xf32>
    %26 = arith.index_cast %arg0 : i32 to index
    %c0_16 = arith.constant 0 : index
    %c0_17 = arith.constant 0 : index
    %c0_18 = arith.constant 0 : index
    %27 = vector.load %arg8[%26, %c0_16, %c0_17, %c0_18] : memref<1x2x5x256xf32, #tpu.memory_space<vmem>>, vector<1x2x5x256xf32>
    %28 = vector.shape_cast %27 : vector<1x2x5x256xf32> to vector<2x5x256xf32>
    %29 = vector.shape_cast %25 : vector<2x5x256xf32> to vector<1x2x5x256xf32>
    tpu.vector_store %arg8[%26, %c0_16, %c0_17, %c0_18], %29 {strides = array<i32>} : memref<1x2x5x256xf32, #tpu.memory_space<vmem>>, vector<1x2x5x256xf32>,
    %30 = arith.index_cast %arg0 : i32 to index
    %c0_19 = arith.constant 0 : index
    %c0_20 = arith.constant 0 : index
    %31 = vector.load %arg9[%30, %c0_19, %c0_20] : memref<1x2x256xf32, #tpu.memory_space<vmem>>, vector<1x2x256xf32>
    %32 = vector.shape_cast %31 : vector<1x2x256xf32> to vector<2x256xf32>
    %33 = arith.addf %32, %13 : vector<2x256xf32>
    %34 = arith.index_cast %arg0 : i32 to index
    %c0_21 = arith.constant 0 : index
    %c0_22 = arith.constant 0 : index
    %35 = vector.load %arg9[%34, %c0_21, %c0_22] : memref<1x2x256xf32, #tpu.memory_space<vmem>>, vector<1x2x256xf32>
    %36 = vector.shape_cast %35 : vector<1x2x256xf32> to vector<2x256xf32>
    %37 = vector.shape_cast %33 : vector<2x256xf32> to vector<1x2x256xf32>
    tpu.vector_store %arg9[%34, %c0_21, %c0_22], %37 {strides = array<i32>} : memref<1x2x256xf32, #tpu.memory_space<vmem>>, vector<1x2x256xf32>,
    %c0_i32_23 = arith.constant 0 : i32
    %38 = arith.cmpi eq, %arg1, %c0_i32_23 : i32
    %39 = arith.extui %38 : i1 to i32
    %c0_i32_24 = arith.constant 0 : i32
    %40 = arith.cmpi ne, %39, %c0_i32_24 : i32
    scf.if %40 {
      %41 = arith.index_cast %arg0 : i32 to index
      %c0_25 = arith.constant 0 : index
      %c0_26 = arith.constant 0 : index
      %c0_27 = arith.constant 0 : index
      %42 = vector.load %arg7[%41, %c0_25, %c0_26, %c0_27] : memref<1x2x5x256xf32, #tpu.memory_space<vmem>>, vector<1x2x5x256xf32>
      %43 = vector.shape_cast %42 : vector<1x2x5x256xf32> to vector<2x5x256xf32>
      %cst_28 = arith.constant dense<0.000000e+00> : vector<2x5xf32>
      %44 = vector.multi_reduction <add>, %43, %cst_28 [2] : vector<2x5x256xf32> to vector<2x5xf32>
      %c0_29 = arith.constant 0 : index
      %c0_30 = arith.constant 0 : index
      %c0_31 = arith.constant 0 : index
      %45 = vector.load %arg4[%c0_29, %c0_30, %c0_31] : memref<1x2x5xf32, #tpu.memory_space<vmem>>, vector<1x2x5xf32>
      %46 = vector.shape_cast %45 : vector<1x2x5xf32> to vector<2x5xf32>
      %47 = vector.shape_cast %44 : vector<2x5xf32> to vector<1x2x5xf32>
      tpu.vector_store %arg4[%c0_29, %c0_30, %c0_31], %47 {strides = array<i32>} : memref<1x2x5xf32, #tpu.memory_space<vmem>>, vector<1x2x5xf32>,
      %48 = arith.index_cast %arg0 : i32 to index
      %c0_32 = arith.constant 0 : index
      %c0_33 = arith.constant 0 : index
      %c0_34 = arith.constant 0 : index
      %49 = vector.load %arg8[%48, %c0_32, %c0_33, %c0_34] : memref<1x2x5x256xf32, #tpu.memory_space<vmem>>, vector<1x2x5x256xf32>
      %50 = vector.shape_cast %49 : vector<1x2x5x256xf32> to vector<2x5x256xf32>
      %cst_35 = arith.constant dense<0.000000e+00> : vector<2x5xf32>
      %51 = vector.multi_reduction <add>, %50, %cst_35 [2] : vector<2x5x256xf32> to vector<2x5xf32>
      %c0_36 = arith.constant 0 : index
      %c0_37 = arith.constant 0 : index
      %c0_38 = arith.constant 0 : index
      %52 = vector.load %arg5[%c0_36, %c0_37, %c0_38] : memref<1x2x5xf32, #tpu.memory_space<vmem>>, vector<1x2x5xf32>
      %53 = vector.shape_cast %52 : vector<1x2x5xf32> to vector<2x5xf32>
      %54 = vector.shape_cast %51 : vector<2x5xf32> to vector<1x2x5xf32>
      tpu.vector_store %arg5[%c0_36, %c0_37, %c0_38], %54 {strides = array<i32>} : memref<1x2x5xf32, #tpu.memory_space<vmem>>, vector<1x2x5xf32>,
      %55 = arith.index_cast %arg0 : i32 to index
      %c0_39 = arith.constant 0 : index
      %c0_40 = arith.constant 0 : index
      %56 = vector.load %arg9[%55, %c0_39, %c0_40] : memref<1x2x256xf32, #tpu.memory_space<vmem>>, vector<1x2x256xf32>
      %57 = vector.shape_cast %56 : vector<1x2x256xf32> to vector<2x256xf32>
      %cst_41 = arith.constant dense<0.000000e+00> : vector<2xf32>
      %58 = vector.multi_reduction <add>, %57, %cst_41 [1] : vector<2x256xf32> to vector<2xf32>
      %59 = vector.shape_cast %58 : vector<2xf32> to vector<2x1xf32>
      %c0_42 = arith.constant 0 : index
      %c0_43 = arith.constant 0 : index
      %c0_44 = arith.constant 0 : index
      %60 = vector.load %arg6[%c0_42, %c0_43, %c0_44] : memref<1x2x1xf32, #tpu.memory_space<vmem>>, vector<1x2x1xf32>
      %61 = vector.shape_cast %60 : vector<1x2x1xf32> to vector<2x1xf32>
      %62 = vector.shape_cast %59 : vector<2x1xf32> to vector<1x2x1xf32>
      tpu.vector_store %arg6[%c0_42, %c0_43, %c0_44], %62 {strides = array<i32>} : memref<1x2x1xf32, #tpu.memory_space<vmem>>, vector<1x2x1xf32>,
    } else {
    }
    return
  }
  func.func @transform_0(%arg0: i32, %arg1: i32) -> (i32, i32, i32) {
    %c1_i32 = arith.constant 1 : i32
    %0 = arith.muli %arg0, %c1_i32 : i32
    %1 = arith.addi %0, %arg1 : i32
    %c0_i32 = arith.constant 0 : i32
    %2 = arith.minsi %1, %c0_i32 : i32
    %c0_i32_0 = arith.constant 0 : i32
    %c0_i32_1 = arith.constant 0 : i32
    %c0_i32_2 = arith.constant 0 : i32
    return %c0_i32_0, %c0_i32_1, %2 : i32, i32, i32
  }
  func.func @transform_1(%arg0: i32, %arg1: i32) -> (i32, i32) {
    %c1_i32 = arith.constant 1 : i32
    %0 = arith.muli %arg0, %c1_i32 : i32
    %1 = arith.addi %0, %arg1 : i32
    %c0_i32 = arith.constant 0 : i32
    %2 = arith.minsi %1, %c0_i32 : i32
    %c0_i32_0 = arith.constant 0 : i32
    %c0_i32_1 = arith.constant 0 : i32
    return %c0_i32_0, %2 : i32, i32
  }
  func.func @transform_2(%arg0: i32, %arg1: i32) -> (i32, i32, i32) {
    %c0_i32 = arith.constant 0 : i32
    %c0_i32_0 = arith.constant 0 : i32
    %c0_i32_1 = arith.constant 0 : i32
    return %arg0, %c0_i32, %c0_i32_0 : i32, i32, i32
  }
  func.func @transform_3(%arg0: i32, %arg1: i32) -> (i32, i32, i32) {
    %c0_i32 = arith.constant 0 : i32
    %c0_i32_0 = arith.constant 0 : i32
    %c0_i32_1 = arith.constant 0 : i32
    return %arg0, %c0_i32, %c0_i32_0 : i32, i32, i32
  }
  func.func @transform_4(%arg0: i32, %arg1: i32) -> (i32, i32, i32) {
    %c0_i32 = arith.constant 0 : i32
    %c0_i32_0 = arith.constant 0 : i32
    %c0_i32_1 = arith.constant 0 : i32
    return %arg0, %c0_i32, %c0_i32_0 : i32, i32, i32
  }
}

</mosaic_0001>

<bundles_post_ra>
// kernel: tpu_custom_call.1
= control target key start
LH: loop header
LB: loop body
LE: loop exit
PB: predicated region body
PF: predicated region fallthrough
CT: control target
= control target key end

     0   :  { %10 = vsyncpa [#allocation6], 0  ;;  %v345_v0 = vmov 0.0   ;;  %vm110_vm0 = vcmask 1040384   ;;  %vm112_vm1 = vcmask 1042434   ;;  %vm114_vm2 = vcmask 1041408   ;;  %s413_s0 = inlined_call_operand.vmem [shape: f32[2,5,256], index: 0, kind: input, shape index: {}]   ;;  %s414_s1 = inlined_call_operand.vmem [shape: f32[2,256], index: 1, kind: input, shape index: {}]   ;;  %s415_s2 = inlined_call_operand.hbm [shape: f32[1,2,5], index: 2, kind: output, shape index: {0}]   ;;  %s416_s3 = inlined_call_operand.hbm [shape: f32[1,2,5], index: 3, kind: output, shape index: {1}]   ;;  %s417_s4 = inlined_call_operand.vmem [shape: f32[1,2,1], index: 4, kind: output, shape index: {2}]  }
   0x1   :  { %93 = vst [vmem:[#allocation3] sm:$0x1f] %v345_v0  ;;  %v105_v1 = vld [vmem:[%s414_s1] sm:$0xf]  ;;  %vm116_vm3 = vcmask 1041409   ;;  %vm118_vm4 = vcmask 1043459  }
   0x2   :  { %94 = vst [vmem:[#allocation3 + $0x18] sm:$0x1f] %v345_v0  ;;  %v107_v2 = vrot.slane %v105_v1, 1  ;;  %v108_v3 = vrot.slane %v105_v1, 2  ;;  %v109_v4 = vrot.slane %v105_v1, 3 }
   0x3   :  { %v101_v5 = vld [vmem:[%s413_s0] sm:$0x1f]  ;;  %87 = vst [vmem:[#allocation2 + $0x10] sm:$0x1f] %v345_v0 }
   0x4   :  { %88 = vst [vmem:[#allocation2] sm:$0x1f] %v345_v0  ;;  %v111_v6 = vsel %vm110_vm0, %v105_v1, %v107_v2  ;;  %v113_v7 = vsel %vm112_vm1, %v108_v3, %v109_v4 }
   0x5   :  { %11 = vsyncpa [#allocation8], 0  ;;  %v102_v8 = vld [vmem:[%s413_s0 + $0x8] sm:$0x1f]  ;;  %89 = vst [vmem:[#allocation2 + $0x18] sm:$0x1f] %v345_v0  ;;  %v115_v9 = vsel %vm114_vm2, %v111_v6, %v113_v7  ;;  %v117_v10 = vsel %vm116_vm3, %v105_v1, %v107_v2  ;;  %v119_v11 = vsel %vm118_vm4, %v108_v3, %v109_v4 }
   0x6   :  { %vm120_vm5 = vcmask 1042433   ;;  %90 = vst [vmem:[#allocation2 + $0x8] sm:$0x1f] %v345_v0  ;;  %v123_v12 = vperm.slane %v115_v9, 0  ;;  %v124_v13 = vperm.slane %v115_v9, 1  ;;  %vm186_vm6 = vcmask 1044480  }
   0x7   :  { %v121_v14 = vsel %vm120_vm5, %v117_v10, %v119_v11  ;;  %95 = vst [vmem:[#allocation3 + $0x8] sm:$0x1f] %v345_v0  ;;  %v103_v15 = vld [vmem:[%s413_s0 + $0x10] sm:$0x1f]  ;;  %v104_v20 = vld [vmem:[%s413_s0 + $0x18] sm:$0x1f] }
   0x8   :  { %v122_v16 = vrot.slane %v121_v14, 1  ;;  %v161_v17 = vld [vmem:[#allocation3] sm:$0x1f]  ;;  %96 = vst [vmem:[#allocation3 + $0x10] sm:$0x1f] %v345_v0  ;;  %v131_v18 = vmul.f32 %v123_v12, %v101_v5  ;;  %v132_v19 = vmul.f32 %v124_v13, %v102_v8  ;;  %s346_s0 = smov [#allocation7]  }
   0x9   :  { %v162_v21 = vld [vmem:[#allocation3 + $0x18] sm:$0x1f]  ;;  %v165_v22 = vadd.f32 %v161_v17, %v101_v5  ;;  %100 = vst [vmem:[#allocation4] sm:$0xf] %v345_v0  ;;  %v199_v5 = vlaneseq  ;;  %s258_s24 = sshll.u32 %s346_s0, 4  ;;  %s260_s27 = sshll.u32 %s416_s3, 4  ;;  %s259_s24 = int_to_ptr.vmem [resolvable:$true] %s258_s24  ;;  %s261_s27 = int_to_ptr.hbm [resolvable:$true] %s260_s27 }
   0xa   :  { %v125_v23 = vperm.slane %v122_v16, 0  ;;  %v126_v24 = vperm.slane %v122_v16, 1  ;;  %v166_v25 = vadd.f32 %v162_v21, %v102_v8  ;;  %v147_v26 = vld [vmem:[#allocation2 + $0x10] sm:$0x1f]  ;;  %vm205_vm7 = vcmask 33792   ;;  %s347_s28 = smov [#allocation5]  }
   0xb   :  { %169 = vst [vmem:[#allocation3] sm:$0x1f] %v165_v22  ;;  %v148_v27 = vld [vmem:[#allocation2] sm:$0x1f]  ;;  %v151_v28 = vadd.f32 %v147_v26, %v131_v18  ;;  %v200_v7 = vand.u32 127, %v199_v5  ;;  %s247_s29 = sshll.u32 %s347_s28, 4  ;;  %s248_s29 = int_to_ptr.vmem [resolvable:$true] %s247_s29 }
   0xc   :  { %v133_v29 = vmul.f32 %v125_v23, %v103_v15  ;;  %v134_v30 = vmul.f32 %v126_v24, %v104_v20  ;;  %170 = vst [vmem:[#allocation3 + $0x18] sm:$0x1f] %v166_v25  ;;  %v152_v31 = vadd.f32 %v148_v27, %v132_v19  ;;  %v149_v32 = vld [vmem:[#allocation2 + $0x18] sm:$0x1f]  ;;  %s249_s6 = sshll.u32 %s415_s2, 4  ;;  %vm240_vm8 = vcmask 1024   ;;  %s250_s6 = int_to_ptr.hbm [resolvable:$true] %s249_s6 }
   0xd   :  { %155 = vst [vmem:[#allocation2 + $0x10] sm:$0x1f] %v151_v28  ;;  %v150_v33 = vld [vmem:[#allocation2 + $0x8] sm:$0x1f] }
   0xe   :  { %v153_v34 = vadd.f32 %v149_v32, %v133_v29  ;;  %156 = vst [vmem:[#allocation2] sm:$0x1f] %v152_v31  ;;  %v163_v35 = vld [vmem:[#allocation3 + $0x8] sm:$0x1f]  ;;  %v154_v36 = vadd.f32 %v150_v33, %v134_v30 }
   0xf   :  { %v164_v37 = vld [vmem:[#allocation3 + $0x10] sm:$0x1f]  ;;  %v167_v38 = vadd.f32 %v163_v35, %v103_v15 }
  0x10   :  { %157 = vst [vmem:[#allocation2 + $0x18] sm:$0x1f] %v153_v34  ;;  %v176_v39 = vld [vmem:[#allocation4] sm:$0xf]  ;;  %v168_v40 = vadd.f32 %v164_v37, %v104_v20 }
  0x11   :  { %158 = vst [vmem:[#allocation2 + $0x8] sm:$0x1f] %v154_v36  ;;  %v177_v41 = vadd.f32 %v176_v39, %v105_v1 }
  0x12   :  { %171 = vst [vmem:[#allocation3 + $0x8] sm:$0x1f] %v167_v38  ;;  %v207_v42 = vld [vmem:[#allocation3] sm:$0x1f] }
  0x13   :  { %172 = vst [vmem:[#allocation3 + $0x10] sm:$0x1f] %v168_v40  ;;  %v208_v43 = vld [vmem:[#allocation3 + $0x18] sm:$0x1f]  ;;  %v211_v44 = vsel %vm186_vm6, %v207_v42, 0.0 }
  0x14   :  { %178 = vst [vmem:[#allocation4] sm:$0xf] %v177_v41  ;;  %v212_v45 = vsel %vm186_vm6, %v208_v43, 0.0  ;;  %v182_v46 = vld [vmem:[#allocation2 + $0x10] sm:$0x1f] }
  0x15   :  { %v213_v47 = vadd.f32 %v212_v45, %v211_v44  ;;  %v183_v48 = vld [vmem:[#allocation2] sm:$0x1f]  ;;  %v187_v49 = vsel %vm186_vm6, %v182_v46, 0.0 }
  0x16   :  { %v188_v50 = vsel %vm186_vm6, %v183_v48, 0.0 }
  0x17   :  { %214 = vadd.xlane.f32.xlu1 %v213_v47  ;;  %v189_v51 = vadd.f32 %v188_v50, %v187_v49  ;;  %v184_v52 = vld [vmem:[#allocation2 + $0x18] sm:$0x1f] }
  0x18   :  { %v185_v53 = vld [vmem:[#allocation2 + $0x8] sm:$0x1f]  ;;  %v192_v58 = vsel %vm186_vm6, %v184_v52, 0.0 }
  0x19   :  { %v209_v54 = vld [vmem:[#allocation3 + $0x8] sm:$0x1f]  ;;  %190 = vadd.xlane.f32.xlu0 %v189_v51  ;;  %v193_v59 = vsel %vm186_vm6, %v185_v53, 0.0 }
  0x1a   :  { %v210_v55 = vld [vmem:[#allocation3 + $0x10] sm:$0x1f]  ;;  %v216_v56 = vsel %vm186_vm6, %v209_v54, 0.0  ;;  %v194_v62 = vadd.f32 %v193_v59, %v192_v58 }
  0x1b   :  { %v217_v57 = vsel %vm186_vm6, %v210_v55, 0.0  ;;  %v228_v60 = vld [vmem:[#allocation4] sm:$0xf] }
  0x1c   :  { %v218_v61 = vadd.f32 %v217_v57, %v216_v56  ;;  %230 = vst [vmem:[#allocation1] ss:$4 sm:$0xff] %v228_v60 }
  0x1f   :  { %219 = vadd.xlane.f32.xlu1 %v218_v61 }
  0x21   :  { %195 = vadd.xlane.f32.xlu0 %v194_v62 }
  0x23   :  { %v231_v63 = vld.sshfl [vmem:[#allocation1] sm:$0xff pattern:$0x73625140]  ;;  %v232_v0 = vld.sshfl [vmem:[#allocation1 + $0x8] sm:$0xff pattern:$0x73625140] }
  0x24   :  { %v235_v1 = vsel %vm114_vm2, %v231_v63, 0.0  ;;  %v236_v2 = vsel %vm114_vm2, %v232_v0, 0.0 }
  0x25   :  { %v237_v3 = vadd.f32 %v236_v2, %v235_v1 }
  0x27   :  { %238 = vadd.xlane.f32.xlu2 %v237_v3 }
  0x8a   :  { %v215_v4 = vpop.xlane.xlu1 %214 }
  0x8b   :  { %v223_v9 = vperm.slane %v215_v4, %v200_v7 }
  0x8c   :  { %v191_v6 = vpop.xlane.xlu0 %190 }
  0x8d   :  { %v201_v12 = vperm.slane %v191_v6, %v200_v7 }
  0x92   :  { %v220_v8 = vpop.xlane.xlu1 %219 }
  0x93   :  { %v224_v10 = vperm.slane %v220_v8, %v200_v7 }
  0x94   :  { %v196_v11 = vpop.xlane.xlu0 %195 }
  0x95   :  { %v202_v13 = vperm.slane %v196_v11, %v200_v7  ;;  %v225_v14 = vsel %vm116_vm3, %v224_v10, %v223_v9 }
  0x96   :  { %227 = vst.msk [vmem:[#allocation7] sm:$0x3] %vm205_vm7, %v225_v14 }
  0x97   :  { %v203_v15 = vsel %vm116_vm3, %v202_v13, %v201_v12  ;;  %263 = dma.vmem_to_hbm [thread:$0]  %s259_s24, 32, %s261_s27, [#allocation8]  }
  0x98   :  { %206 = vst.msk [vmem:[#allocation5] sm:$0x3] %vm205_vm7, %v203_v15 }
  0x99   :  { %252 = dma.vmem_to_hbm [thread:$0]  %s248_s29, 32, %s250_s6, [#allocation6]  }
  0x9a   :  { %v239_v16 = vpop.xlane.xlu2 %238 }
  0x9b   :  { %241 = vst.msk [vmem:[%s417_s4] sm:$0x3] %vm240_vm8, %v239_v16 }
  0x9c   :  { %341 = dma.done.wait [#allocation6], 32  }
  0x9d   :  { %342 = vsyncadd [#allocation6], 4294967264 }
  0x9e   :  { %343 = dma.done.wait [#allocation8], 32  }
  0x9f   :  { %344 = vsyncadd [#allocation8], 4294967264 }
  0xa0   :  { %276 = vsyncpa [#allocation6], 1 }
  0xa1   :  { %277 = vsyncpa [#allocation8], 1 }

</bundles_post_ra>
